<compile_context>
chip_gen: v7x
topology: tpu7x:2x2x1
jax: 0.10.0
libtpu: 0.0.40
codegen_flags: <defaults>
</compile_context>

<pallas_src>
import jax
import jax.numpy as jnp
from jax import lax
from jax.experimental import pallas as pl
from jax.experimental.pallas import tpu as pltpu

BN_EPS = 1e-5
TM = 256  # conv M tile; raise to 512-1024 for production-size DSAE inputs.

_VMEM = pl.BlockSpec(memory_space=pltpu.MemorySpace.VMEM)
_SMEM = pl.BlockSpec(memory_space=pltpu.MemorySpace.SMEM)


def _round_up(x, m):
    return (x + m - 1) // m * m


# ---------------------------------------------------------------------------
# Kernel 1a: conv-as-matmul (bf16 MXU, f32 acc) + per-channel sum / sum-of-squares
#            accumulation for training-mode BatchNorm.  Grid over M tiles
#            ('arbitrary' axis: sum/sumsq blocks are resident accumulators).
# ---------------------------------------------------------------------------
def _conv_stats_kernel(p_ref, w_ref, y_ref, sum_ref, sq_ref):
    y = jnp.dot(p_ref[...], w_ref[...], preferred_element_type=jnp.float32)
    y_ref[...] = y

    @pl.when(pl.program_id(0) == 0)
    def _():
        sum_ref[...] = jnp.zeros_like(sum_ref)
        sq_ref[...] = jnp.zeros_like(sq_ref)

    sum_ref[...] += jnp.sum(y, axis=0, keepdims=True)
    sq_ref[...] += jnp.sum(y * y, axis=0, keepdims=True)


# ---------------------------------------------------------------------------
# Kernel 1b: fused BatchNorm apply (precomputed per-channel scale/shift) + ReLU.
#            Grid over M tiles ('parallel' -> megacore sharding on v7x).
# ---------------------------------------------------------------------------
def _bn_relu_kernel(y_ref, scale_ref, shift_ref, o_ref):
    o_ref[...] = jnp.maximum(y_ref[...] * scale_ref[...] + shift_ref[...], 0.0)


def conv_bn_relu_layer(x_nhwc, layer, stride):
    """One Conv2d (no bias) + BatchNorm2d (batch stats) + ReLU, via im2col matmul."""
    n = x_nhwc.shape[0]
    k = layer["k"]
    # bf16 patches: halves conv input HBM traffic; matmul accumulates in f32.
    patches, oh, ow = im2col(x_nhwc.astype(jnp.bfloat16), k, k, stride)
    m, k_dim = patches.shape
    k_pad, c_pad = layer["w"].shape

    m_pad = _round_up(m, TM)
    p = jnp.pad(patches, ((0, m_pad - m), (0, k_pad - k_dim)))  # zero rows/cols: no effect on stats

    grid = (m_pad // TM,)
    cparams = pltpu.CompilerParams(
        dimension_semantics=("arbitrary",),          # stats accumulate across M
        vmem_limit_bytes=32 * 1024 * 1024,
    )
    y, s, sq = pl.pallas_call(
        _conv_stats_kernel,
        out_shape=(
            jax.ShapeDtypeStruct((m_pad, c_pad), jnp.float32),
            jax.ShapeDtypeStruct((1, c_pad), jnp.float32),
            jax.ShapeDtypeStruct((1, c_pad), jnp.float32),
        ),
        grid=grid,
        in_specs=[
            pl.BlockSpec((TM, k_pad), lambda i: (i, 0)),
            pl.BlockSpec((k_pad, c_pad), lambda i: (0, 0)),   # weights resident
        ],
        out_specs=(
            pl.BlockSpec((TM, c_pad), lambda i: (i, 0)),
            pl.BlockSpec((1, c_pad), lambda i: (0, 0)),       # resident accumulators
            pl.BlockSpec((1, c_pad), lambda i: (0, 0)),
        ),
        compiler_params=cparams,
    )(p, layer["w"])

    # Tiny per-channel finalize in plain JAX: biased variance (PyTorch BN fwd),
    # fold gamma/beta/mean/var into a single scale + shift.
    m_f = float(m)
    mean = s / m_f
    var = jnp.maximum(sq / m_f - mean * mean, 0.0)
    scale = layer["gamma"].reshape(1, -1) * lax.rsqrt(var + BN_EPS)
    shift = layer["beta"].reshape(1, -1) - mean * scale

    out = pl.pallas_call(
        _bn_relu_kernel,
        out_shape=jax.ShapeDtypeStruct((m_pad, c_pad), jnp.float32),
        grid=grid,
        in_specs=[
            pl.BlockSpec((TM, c_pad), lambda i: (i, 0)),
            pl.BlockSpec((1, c_pad), lambda i: (0, 0)),
            pl.BlockSpec((1, c_pad), lambda i: (0, 0)),
        ],
        out_specs=pl.BlockSpec((TM, c_pad), lambda i: (i, 0)),
        compiler_params=pltpu.CompilerParams(
            dimension_semantics=("parallel",),
            vmem_limit_bytes=32 * 1024 * 1024,
        ),
    )(y, scale, shift)

    cout = layer["cout"]
    return out[:m, :cout].reshape(n, oh, ow, cout)


# ---------------------------------------------------------------------------
# Kernel 2: SpatialSoftArgmax — softmax over flattened (h*w) per feature map,
#           coordinate expectation via VPU multiplies + lane reductions
#           (no MXU pass, no 2-wide masked matmul output).
# ---------------------------------------------------------------------------
def _ssam_kernel(temp_ref, x_ref, xs_ref, ys_ref, o_ref):
    inv_t = 1.0 / temp_ref[0]                    # scalar reciprocal on the scalar unit
    logits = x_ref[...] * inv_t
    m = jnp.max(logits, axis=1, keepdims=True)
    e = jnp.exp(logits - m)
    denom = jnp.sum(e, axis=1, keepdims=True)
    p = e * pl.reciprocal(denom, approx=True)    # divide -> EUP slot
    ex = jnp.sum(p * xs_ref[...], axis=1, keepdims=True)   # E[x] (column index)
    ey = jnp.sum(p * ys_ref[...], axis=1, keepdims=True)   # E[y] (row index)
    o_ref[...] = jnp.concatenate([ex, ey], axis=1)


def spatial_soft_argmax(feat, xs_row, ys_row, temperature):
    nc, hw = feat.shape
    r_tile = 8
    nc_pad = _round_up(nc, r_tile)
    f = jnp.pad(feat, ((0, nc_pad - nc), (0, 0)))
    out = pl.pallas_call(
        _ssam_kernel,
        out_shape=jax.ShapeDtypeStruct((nc_pad, 2), jnp.float32),
        grid=(nc_pad // r_tile,),
        in_specs=[
            _SMEM,                                            # temperature scalar
            pl.BlockSpec((r_tile, hw), lambda i: (i, 0)),
            pl.BlockSpec((1, hw), lambda i: (0, 0)),
            pl.BlockSpec((1, hw), lambda i: (0, 0)),
        ],
        out_specs=pl.BlockSpec((r_tile, 2), lambda i: (i, 0)),
        compiler_params=pltpu.CompilerParams(dimension_semantics=("parallel",)),
    )(temperature, f, xs_row, ys_row)
    return out[:nc]


# ---------------------------------------------------------------------------
# Kernel 3: DSDecoder — Linear(latent -> H*W) + Tanh.  Output columns padded to
#           a multiple of 128 for lane-dense stores; tiny, single block.
# ---------------------------------------------------------------------------
def _decoder_kernel(z_ref, w_ref, b_ref, o_ref):
    y = jnp.dot(z_ref[...], w_ref[...], preferred_element_type=jnp.float32) + b_ref[...]
    o_ref[...] = jnp.tanh(y)


def decoder_linear(z, w_pad, b_pad):
    n = z.shape[0]
    hw_pad = w_pad.shape[1]
    return pl.pallas_call(
        _decoder_kernel,
        out_shape=jax.ShapeDtypeStruct((n, hw_pad), jnp.float32),
        in_specs=[_VMEM, _VMEM, _VMEM],
        out_specs=_VMEM,
    )(z, w_pad, b_pad)


# ---------------------------------------------------------------------------
# Plain-JAX glue: im2col patch extraction (no transpose — column order is
# (kh, kw, cin) with cin fastest, matching the synthetic weight layout).
# ---------------------------------------------------------------------------
def im2col(x_nhwc, kh, kw, stride):
    n, h, w, c = x_nhwc.shape
    oh = (h - kh) // stride + 1
    ow = (w - kw) // stride + 1
    cols = []
    for i in range(kh):
        for j in range(kw):
            cols.append(x_nhwc[:, i:i + stride * oh:stride, j:j + stride * ow:stride, :])
    p = jnp.stack(cols, axis=3)                   # (N, oh, ow, kh*kw, C) — contiguous, no transpose
    return p.reshape(n * oh * ow, kh * kw * c), oh, ow


# ---------------------------------------------------------------------------
# Parameter init (deterministic, synthetic — shapes follow the module __init__).
# Conv weights stored pre-padded to (K_pad, C_pad) in bf16; conv bias omitted
# (it is exactly cancelled by the BatchNorm mean subtraction that follows).
# ---------------------------------------------------------------------------
def init_params(key, in_channels, out_channels, latent_dim, image_output_size):
    keys = jax.random.split(key, 8)
    params = {"conv": []}
    conv_specs = [
        (in_channels, out_channels[0], 7),
        (out_channels[0], out_channels[1], 5),
        (out_channels[1], out_channels[2], 5),
    ]
    for idx, (cin, cout, k) in enumerate(conv_specs):
        k_dim = cin * k * k
        bound = 1.0 / (k_dim ** 0.5)
        w = jax.random.uniform(keys[2 * idx], (k_dim, cout), jnp.float32, -bound, bound)
        k_pad = _round_up(k_dim, 128)             # 147 -> 256, 200 -> 256
        c_pad = _round_up(cout, 128)              # lane-dense output channels
        w_p = jnp.zeros((k_pad, c_pad), jnp.float32).at[:k_dim, :cout].set(w)
        params["conv"].append(dict(
            w=w_p.astype(jnp.bfloat16),
            gamma=jnp.ones((c_pad,), jnp.float32),    # nn.BatchNorm2d default affine init
            beta=jnp.zeros((c_pad,), jnp.float32),
            k=k, cout=cout,
        ))
    hh, ww = image_output_size
    hw = hh * ww
    hw_pad = _round_up(hw, 128)
    bound = 1.0 / (latent_dim ** 0.5)
    dw = jax.random.uniform(keys[6], (latent_dim, hw), jnp.float32, -bound, bound)
    db = jax.random.uniform(keys[7], (hw,), jnp.float32, -bound, bound)
    params["dec_w"] = jnp.zeros((latent_dim, hw_pad), jnp.float32).at[:, :hw].set(dw)
    params["dec_b"] = jnp.zeros((1, hw_pad), jnp.float32).at[:, :hw].set(db)
    params["temperature"] = jnp.ones((1,), jnp.float32)   # nn.Parameter(torch.ones(1))
    return params


# ---------------------------------------------------------------------------
# Full forward pass of DeepSpatialAutoEncoder.
# ---------------------------------------------------------------------------
def deep_spatial_autoencoder(params, x_nchw, image_output_size):
    x = jnp.transpose(x_nchw, (0, 2, 3, 1)).astype(jnp.float32)   # NCHW -> NHWC
    strides = (2, 1, 1)
    for layer, s in zip(params["conv"], strides):
        x = conv_bn_relu_layer(x, layer, s)

    n, h, w, c = x.shape
    feat = jnp.transpose(x, (0, 3, 1, 2)).reshape(n * c, h * w)   # one row per feature map

    # image coordinates, normalise=False: (x, y) == (col, row) raw indices
    ys, xs = jnp.meshgrid(jnp.arange(h, dtype=jnp.float32),
                          jnp.arange(w, dtype=jnp.float32), indexing="ij")
    xs_row = xs.reshape(1, h * w)
    ys_row = ys.reshape(1, h * w)

    sf = spatial_soft_argmax(feat, xs_row, ys_row, params["temperature"])  # (N*C, 2)
    z = sf.reshape(n, c * 2)                                               # view(n, c*2)

    hh, ww = image_output_size
    out = decoder_linear(z, params["dec_w"], params["dec_b"])              # tanh inside
    return out[:, :hh * ww].reshape(n, 1, hh, ww)                          # view(-1, 1, H, W)


if __name__ == "__main__":
    # small config consistent with the module constraint out_channels[-1]*2 == latent_dimension
    in_channels = 3
    out_channels = (8, 8, 8)
    latent_dimension = 16
    image_output_size = (16, 16)

    key = jax.random.PRNGKey(0)
    pkey, xkey = jax.random.split(key)
    params = init_params(pkey, in_channels, out_channels, latent_dimension, image_output_size)

    x = jax.random.normal(xkey, (2, in_channels, 32, 32), jnp.float32)  # NCHW, like PyTorch

    out = deep_spatial_autoencoder(params, x, image_output_size)
    out = jax.block_until_ready(out)
    assert out.shape == (2, 1, 16, 16), out.shape
    assert out.dtype == jnp.float32
    print("KERNEL_OK")
</pallas_src>

<mosaic_0001>
module attributes {stable_mosaic.version = 11 : i64} {
  func.func @_conv_stats_kernel(%arg0: i32, %arg1: memref<256x256xbf16, #tpu.memory_space<vmem>>, %arg2: memref<256x128xbf16, #tpu.memory_space<vmem>>, %arg3: memref<256x128xf32, #tpu.memory_space<vmem>>, %arg4: memref<1x128xf32, #tpu.memory_space<vmem>>, %arg5: memref<1x128xf32, #tpu.memory_space<vmem>>) attributes {dimension_semantics = [#tpu.dimension_semantics<arbitrary>], iteration_bounds = array<i64: 2>, scalar_prefetch = 0 : i64, scratch_operands = 0 : i64, tpu.core_type = #tpu.core_type<tc>, window_params = [{transform_indices = @transform_0, window_bounds = array<i64: 256, 256>}, {pipeline_mode = #tpu.pipeline_mode<synchronous>, transform_indices = @transform_1, window_bounds = array<i64: 256, 128>}, {transform_indices = @transform_2, window_bounds = array<i64: 256, 128>}, {pipeline_mode = #tpu.pipeline_mode<synchronous>, transform_indices = @transform_3, window_bounds = array<i64: 1, 128>}, {pipeline_mode = #tpu.pipeline_mode<synchronous>, transform_indices = @transform_4, window_bounds = array<i64: 1, 128>}]} {
    %c0 = arith.constant 0 : index
    %c0_0 = arith.constant 0 : index
    %0 = vector.load %arg1[%c0, %c0_0] : memref<256x256xbf16, #tpu.memory_space<vmem>>, vector<256x256xbf16>
    %c0_1 = arith.constant 0 : index
    %c0_2 = arith.constant 0 : index
    %1 = vector.load %arg2[%c0_1, %c0_2] : memref<256x128xbf16, #tpu.memory_space<vmem>>, vector<256x128xbf16>
    %cst = arith.constant dense<0.000000e+00> : vector<256x128xf32>
    %2 = tpu.matmul %0, %1, %cst {dimension_numbers = #tpu.dot_dimension_numbers<[1], [0], [0], [1], [0, 0, 1, 1], [], []>} : vector<256x256xbf16>, vector<256x128xbf16>, vector<256x128xf32> -> vector<256x128xf32>
    %c0_3 = arith.constant 0 : index
    %c0_4 = arith.constant 0 : index
    %3 = vector.load %arg3[%c0_3, %c0_4] : memref<256x128xf32, #tpu.memory_space<vmem>>, vector<256x128xf32>
    tpu.vector_store %arg3[%c0_3, %c0_4], %2 {strides = array<i32>} : memref<256x128xf32, #tpu.memory_space<vmem>>, vector<256x128xf32>,
    %c0_i32 = arith.constant 0 : i32
    %4 = arith.cmpi eq, %arg0, %c0_i32 : i32
    %5 = arith.extui %4 : i1 to i32
    %c0_i32_5 = arith.constant 0 : i32
    %6 = arith.cmpi ne, %5, %c0_i32_5 : i32
    scf.if %6 {
      %cst_16 = arith.constant 0.000000e+00 : f32
      %18 = vector.broadcast %cst_16 : f32 to vector<1x128xf32>
      %c0_17 = arith.constant 0 : index
      %c0_18 = arith.constant 0 : index
      %19 = vector.load %arg4[%c0_17, %c0_18] : memref<1x128xf32, #tpu.memory_space<vmem>>, vector<1x128xf32>
      tpu.vector_store %arg4[%c0_17, %c0_18], %18 {strides = array<i32>} : memref<1x128xf32, #tpu.memory_space<vmem>>, vector<1x128xf32>,
      %cst_19 = arith.constant 0.000000e+00 : f32
      %20 = vector.broadcast %cst_19 : f32 to vector<1x128xf32>
      %c0_20 = arith.constant 0 : index
      %c0_21 = arith.constant 0 : index
      %21 = vector.load %arg5[%c0_20, %c0_21] : memref<1x128xf32, #tpu.memory_space<vmem>>, vector<1x128xf32>
      tpu.vector_store %arg5[%c0_20, %c0_21], %20 {strides = array<i32>} : memref<1x128xf32, #tpu.memory_space<vmem>>, vector<1x128xf32>,
    } else {
    }
    %c0_6 = arith.constant 0 : index
    %c0_7 = arith.constant 0 : index
    %7 = vector.load %arg4[%c0_6, %c0_7] : memref<1x128xf32, #tpu.memory_space<vmem>>, vector<1x128xf32>
    %cst_8 = arith.constant dense<0.000000e+00> : vector<128xf32>
    %8 = vector.multi_reduction <add>, %2, %cst_8 [0] : vector<256x128xf32> to vector<128xf32>
    %9 = vector.shape_cast %8 : vector<128xf32> to vector<1x128xf32>
    %10 = arith.addf %7, %9 : vector<1x128xf32>
    %c0_9 = arith.constant 0 : index
    %c0_10 = arith.constant 0 : index
    %11 = vector.load %arg4[%c0_9, %c0_10] : memref<1x128xf32, #tpu.memory_space<vmem>>, vector<1x128xf32>
    tpu.vector_store %arg4[%c0_9, %c0_10], %10 {strides = array<i32>} : memref<1x128xf32, #tpu.memory_space<vmem>>, vector<1x128xf32>,
    %c0_11 = arith.constant 0 : index
    %c0_12 = arith.constant 0 : index
    %12 = vector.load %arg5[%c0_11, %c0_12] : memref<1x128xf32, #tpu.memory_space<vmem>>, vector<1x128xf32>
    %13 = arith.mulf %2, %2 : vector<256x128xf32>
    %cst_13 = arith.constant dense<0.000000e+00> : vector<128xf32>
    %14 = vector.multi_reduction <add>, %13, %cst_13 [0] : vector<256x128xf32> to vector<128xf32>
    %15 = vector.shape_cast %14 : vector<128xf32> to vector<1x128xf32>
    %16 = arith.addf %12, %15 : vector<1x128xf32>
    %c0_14 = arith.constant 0 : index
    %c0_15 = arith.constant 0 : index
    %17 = vector.load %arg5[%c0_14, %c0_15] : memref<1x128xf32, #tpu.memory_space<vmem>>, vector<1x128xf32>
    tpu.vector_store %arg5[%c0_14, %c0_15], %16 {strides = array<i32>} : memref<1x128xf32, #tpu.memory_space<vmem>>, vector<1x128xf32>,
    return
  }
  func.func @transform_0(%arg0: i32) -> (i32, i32) {
    %c0_i32 = arith.constant 0 : i32
    %c0_i32_0 = arith.constant 0 : i32
    return %arg0, %c0_i32 : i32, i32
  }
  func.func @transform_1(%arg0: i32) -> (i32, i32) {
    %c0_i32 = arith.constant 0 : i32
    %c0_i32_0 = arith.constant 0 : i32
    %c0_i32_1 = arith.constant 0 : i32
    return %c0_i32, %c0_i32_0 : i32, i32
  }
  func.func @transform_2(%arg0: i32) -> (i32, i32) {
    %c0_i32 = arith.constant 0 : i32
    %c0_i32_0 = arith.constant 0 : i32
    return %arg0, %c0_i32 : i32, i32
  }
  func.func @transform_3(%arg0: i32) -> (i32, i32) {
    %c0_i32 = arith.constant 0 : i32
    %c0_i32_0 = arith.constant 0 : i32
    %c0_i32_1 = arith.constant 0 : i32
    return %c0_i32, %c0_i32_0 : i32, i32
  }
  func.func @transform_4(%arg0: i32) -> (i32, i32) {
    %c0_i32 = arith.constant 0 : i32
    %c0_i32_0 = arith.constant 0 : i32
    %c0_i32_1 = arith.constant 0 : i32
    return %c0_i32, %c0_i32_0 : i32, i32
  }
}

</mosaic_0001>

<bundles_post_ra>
// kernel: tpu_custom_call.1
= control target key start
LH: loop header
LB: loop body
LE: loop exit
PB: predicated region body
PF: predicated region fallthrough
CT: control target
= control target key end

     0   :  { %10 = vsyncpa [#allocation3], 0  ;;  %s2077_s0 = inlined_call_operand.hbm [shape: bf16[512,256], index: 0, kind: input, shape index: {}]   ;;  %s2078_s1 = inlined_call_operand.hbm [shape: bf16[256,128], index: 1, kind: input, shape index: {}]   ;;  %s2079_s2 = inlined_call_operand.hbm [shape: f32[512,128], index: 2, kind: output, shape index: {0}]   ;;  %s2080_s3 = inlined_call_operand.hbm [shape: f32[1,128], index: 3, kind: output, shape index: {1}]   ;;  %s2081_s4 = inlined_call_operand.hbm [shape: f32[1,128], index: 4, kind: output, shape index: {2}]  }
   0x1   :  { %12 = vsyncpa [#allocation3 + $0x1], 0 }
   0x2   :  { %13 = vsyncpa [#allocation6], 0 }
   0x3   :  { %14 = vsyncpa [#allocation4], 0 }
   0x4   :  { %16 = vsyncpa [#allocation4 + $0x1], 0 }
   0x5   :  { %17 = vsyncpa [#allocation9], 0  ;;  %s1568_s15 = smov 0   ;;  %s1570_s16 = smov 0  }
   0x6   :  { %s1572_s17 = smov 0   ;;  %s1574_s18 = smov 0  }
   0x7 LB: > { %s1589_s19 = sadd.s32 4294967295, %s1529_s18   ;;  %s1002_s20 = sadd.s32 4294967294, %s1529_s18   ;;  %s1529_s18 = sphi %s1574_s18, %s2109_s18   ;;  %s1525_s17 = sphi %s1572_s17, %s2108_s17   ;;  %s1521_s16 = sphi %s1570_s16, %s2107_s16   ;;  %s1517_s15 = sphi %s1568_s15, %s2106_s15  }
   0x8   : > { %p43_p0 = scmp.ne.s32.totalorder %s1521_s16, %s1517_s15  ;;  %p2082_p1 = scmp.eq.s32.totalorder %s1589_s19, 0 }
   0x9   : > { %p94_p3 = scmp.eq.s32.totalorder %s1002_s20, 1  ;;  %p1003_p5 = scmp.ge.s32.totalorder %s1529_s18, 1 }
   0xa   : > { %p1598_p4 = por %p2082_p1, %p43_p0  ;;  %p143_p7 = scmp.lt.s32.totalorder %s1529_s18, 3 }
   0xb   : > { %p1603_p6 = por %p94_p3, %p43_p0  ;;  %s1531_s24 = smov [#allocation5]  }
   0xc   : > { %s2085_s21 = scalar_select %p1598_p4, 1, 0 }
   0xd   : > { %s2086_s22 = scalar_select %p1603_p6, 1, 0 }
   0xe   : > { %p1609_p9 = pnand %p1003_p5, %p143_p7  ;;  %s155_s25 = sshll.u32 %s1531_s24, 4  ;;  %s1613_s25 = int_to_ptr.vmem [resolvable:$true] %s155_s25 }
   0xf   : > { %s1625_s27 = sadd.s32 1, %s1529_s18   ;;  %s30_s28 = sadd.s32 1, %s1525_s17 }
  0x10   : > { %s2087_s23 = scalar_select %p1609_p9, 1, 0 }
  0x11   : > { %p1219_p10 = pneg %p1609_p9  ;;  %s27_s29 = ssub.s32 %s1529_s18, %s1625_s27 }
  0x12   : > { %s1345_s6 = scalar_lea.hbm %s2078_s1, 2048 }
  0x13   : > { %p1620_p12 = pnand %p1219_p10, %p2082_p1  ;;  %p1346_p13 = scmp.ne.s32.totalorder %s2078_s1, %s1345_s6 }
  0x14   : > { %p1352_p7 = scmp.lt.u32.totalorder %s1345_s6, %s2078_s1 }
  0x15   : > { %p1347_p0 = pneg %p1620_p12 }
  0x17   : > { %p1348_p3 = pnand %p1347_p0, %p1346_p13 }
  0x19   : > { %p1349_p5 = pneg %p1348_p3 }
  0x1b   : > { %p1354_p10 = pnand %p1352_p7, %p1349_p5 }
  0x1d   : > { %1357 = shalt.err (!%p1354_p10)
}
  0x1e   : > { %s1358_s11 = scalar_lea.vmem %s1613_s25, 2048  ;;  %p1366_p2 = scmp.lt.s32.totalorder %s1613_s25, %s1613_s25 }
  0x1f   : > { %p1359_p11 = scmp.ne.s32.totalorder %s1613_s25, %s1358_s11  ;;  %p1367_p6 = scmp.lt.s32.totalorder %s1358_s11, %s1358_s11 }
  0x21   : > { %p1361_p8 = pnand %p1359_p11, %p1347_p0  ;;  %p1368_p4 = por %p1367_p6, %p1366_p2 }
  0x23   : > { %p1362_p1 = pneg %p1361_p8 }
  0x25   : > { %p1369_p9 = pnand %p1368_p4, %p1362_p1 }
  0x27   : > { %1372 = shalt.err (!%p1369_p9)
}
  0x28   : > { %s1532_s12 = smov 64   ;;  %s1533_s13 = smov 4  }
  0x29   : > { %1222 = dma.hbm_to_vmem [thread:$0]  (!%p1620_p12), %s2078_s1, 2048, %s1613_s25, [#allocation6], %s1532_s12, %s1532_s12, %s1533_s13  }
  0x2a   : > { %p28_p2 = scmp.eq.s32.totalorder %s27_s29, 0  ;;  %p37_p1 = scmp.ne.s32.totalorder %s1525_s17, %s1521_s16 }
  0x2b   : > { %p38_p4 = scmp.eq.s32.totalorder %s1529_s18, 0  ;;  %p1232_p6 = scmp.lt.s32.totalorder %s1529_s18, 2 }
  0x2c   : > { %s1656_s24 = scalar_select %p28_p2, %s1525_s17, %s30_s28  }
  0x2d   : > { %p39_p8 = por %p38_p4, %p37_p1  ;;  %p2089_p9 = scmp.eq.s32.totalorder %s1589_s19, 1 }
  0x2e   : > { %s169_s5 = sand.u32 1, %s1525_s17   ;;  %s1073_s6 = sshll.u32 %s1529_s18, 12 }
  0x2f   : > { %p1660_p11 = por %p2089_p9, %p37_p1  ;;  %s1006_s7 = sshll.u32 %s169_s5, 8 }
  0x30   : > { %s1669_s9 = scalar_lea.hbm %s2077_s0, %s1073_s6  ;;  %s173_s25 = scalar_lea.vmem [#allocation2], %s1006_s7 }
  0x31   : > { %s181_s28 = sshll.u32 %s173_s25, 4  ;;  %p1671_p12 = pnand %p1232_p6, %p39_p8  ;;  %s1675_s28 = int_to_ptr.vmem [resolvable:$true] %s181_s28 }
  0x32   : > { %s1677_s10 = scalar_lea.sflag [#allocation3], %s169_s5  ;;  %s1373_s11 = scalar_lea.hbm %s1669_s9, 4096 }
  0x33   : > { %p1374_p13 = scmp.ne.s32.totalorder %s1669_s9, %s1373_s11  ;;  %p1375_p0 = pneg %p1671_p12 }
  0x34   : > { %s1378_s14 = scalar_lea.hbm %s2077_s0, 8192  ;;  %p1379_p7 = scmp.lt.u32.totalorder %s1669_s9, %s2077_s0 }
  0x35   : > { %p1376_p3 = pnand %p1375_p0, %p1374_p13  ;;  %p1380_p10 = scmp.lt.u32.totalorder %s1378_s14, %s1373_s11 }
  0x36   : > { %p1382_p1 = scmp.lt.u32.totalorder %s1373_s11, %s1669_s9 }
  0x37   : > { %p1377_p5 = pneg %p1376_p3  ;;  %p1381_p2 = por %p1380_p10, %p1379_p7 }
  0x39   : > { %p1383_p4 = por %p1382_p1, %p1381_p2 }
  0x3b   : > { %p1384_p6 = pnand %p1383_p4, %p1377_p5 }
  0x3d   : > { %1387 = shalt.err (!%p1384_p6)
}
  0x3e   : > { %s1388_s5 = scalar_lea.vmem %s1675_s28, 4096  ;;  %s1534_s7 = smov [#allocation2]  }
  0x3f   : > { %p1389_p8 = scmp.ne.s32.totalorder %s1675_s28, %s1388_s5  ;;  %s1393_s26 = sshll.u32 %s1534_s7, 4  ;;  %s1394_s26 = int_to_ptr.vmem [resolvable:$false] %s1393_s26 }
  0x40   : > { %s1395_s8 = scalar_lea.vmem %s1394_s26, 8192  ;;  %p1396_p3 = scmp.lt.s32.totalorder %s1675_s28, %s1394_s26 }
  0x41   : > { %p1391_p9 = pnand %p1389_p8, %p1375_p0  ;;  %p1397_p7 = scmp.lt.s32.totalorder %s1395_s8, %s1388_s5 }
  0x43   : > { %p1392_p13 = pneg %p1391_p9  ;;  %p1398_p10 = por %p1397_p7, %p1396_p3 }
  0x45   : > { %p1399_p2 = pnand %p1398_p10, %p1392_p13 }
  0x47   : > { %1402 = shalt.err (!%p1399_p2)
}
  0x48   : > { %s1535_s25 = smov 128   ;;  %s1536_s11 = smov 8  }
  0x49   : > { %1226 = dma.hbm_to_vmem [thread:$0]  (!%p1671_p12), %s1669_s9, 4096, %s1675_s28, %s1677_s10, %s1535_s25, %s1535_s25, %s1536_s11  }
  0x4a   : > { %p2092_p0 = scmp.ne.s32.totalorder %s2087_s23, 0 }
  0x4b   : > { %s1708_s12 = sand.u32 (!%p2092_p0), 1, %s1521_s16   ;;  %p2093_p5 = scmp.ne.s32.totalorder (!%p2092_p0), %s2085_s21, 0 }
  0x4c   : > { %193 = sbr.rel (%p2092_p0) target bundleno = 526 (0x20e), region = 28  ;;  %s1011_s13 = sshll.u32 (!%p2092_p0), %s1708_s12, 8 }
  0x4d   : > { %s196_s14 = scalar_lea.sflag (!%p2092_p0), [#allocation3], %s1708_s12  ;;  %s1714_s20 = scalar_lea.vmem (!%p2092_p0), [#allocation2], %s1011_s13 }
  0x53   : > { %1500 = dma.done.wait (%p2093_p5), %s196_s14, 4096  }
  0x54   : > { %1502 = vsyncadd (%p2093_p5), %s196_s14, 4294963200  ;;  %p2094_p12 = scmp.eq.s32.totalorder %s1589_s19, 0 }
  0x56   : > { %1504 = dma.done.wait (%p2094_p12), [#allocation6], 2048   ;;  %p2095_p1 = pmov %p2094_p12 }
  0x57   : > { %v1281_v0 = vld [vmem:[#allocation5 + $0x40] sm:$0xff]   ;;  %v1283_v2 = vld [vmem:[#allocation5 + $0x48] sm:$0xff]   ;;  %v1285_v4 = vld [vmem:[#allocation5 + $0x50] sm:$0xff]   ;;  %s1762_s21 = scalar_lea.vmem [#allocation7], %s1011_s13  ;;  %p2096_p4 = scmp.ne.s32.totalorder %s1589_s19, 0 }
  0x58   : > { %1506 = vsyncadd (%p2095_p1), [#allocation6], 4294965248  ;;  %v1282_v1 = vld [vmem:[#allocation5] sm:$0xff]   ;;  %1075 = vmatprep.subr.bf16.mxu0 %v1281_v0  ;;  %1187 = vmatprep.subr.bf16.mxu1 %v1281_v0  ;;  %v1284_v3 = vld [vmem:[#allocation5 + $0x8] sm:$0xff]  }
  0x59   : > { %1076 = vmatpush3.bf16.msra.mxu0 %v1282_v1  ;;  %1195 = vmatpush3.bf16.msra.mxu1 %v1282_v1  ;;  %v1286_v5 = vld [vmem:[#allocation5 + $0x10] sm:$0xff]   ;;  %v1287_v6 = vld [vmem:[#allocation5 + $0x58] sm:$0xff]   ;;  %v1289_v8 = vld [vmem:[#allocation5 + $0x60] sm:$0xff]  }
  0x5a   : > { %1077 = vmatprep.subr.bf16.mxu0 %v1283_v2  ;;  %1188 = vmatprep.subr.bf16.mxu1 %v1283_v2  ;;  %v1288_v7 = vld [vmem:[#allocation5 + $0x18] sm:$0xff]   ;;  %v1290_v9 = vld [vmem:[#allocation5 + $0x20] sm:$0xff]   ;;  %v1291_v10 = vld [vmem:[#allocation5 + $0x68] sm:$0xff]  }
  0x5b   : > { %v1299_v11 = vld [vmem:[%s1714_s20 + $0x4] ss:$8 sps:$4 sm:$0xff]   ;;  %v1293_v14 = vld [vmem:[#allocation5 + $0x70] sm:$0xff]   ;;  %v1295_v16 = vld [vmem:[#allocation5 + $0x78] sm:$0xff]  }
  0x5c   : > { %v1302_v12 = vld [vmem:[%s1714_s20 + $0x84] ss:$8 sps:$4 sm:$0xff]   ;;  %583 = vmatprep.mubr.bf16.mxu0 %v1299_v11  ;;  %v1294_v15 = vld [vmem:[#allocation5 + $0x30] sm:$0xff]   ;;  %v1296_v17 = vld [vmem:[#allocation5 + $0x38] sm:$0xff]  }
  0x5d   : > { %1078 = vmatpush3.bf16.msra.mxu0 %v1284_v3  ;;  %1196 = vmatpush3.bf16.msra.mxu1 %v1284_v3  ;;  %v1292_v13 = vld [vmem:[#allocation5 + $0x28] sm:$0xff]   ;;  %v1303_v20 = vld [vmem:[%s1714_s20 + $0x14] ss:$8 sps:$4 sm:$0xff]   ;;  %v1307_v22 = vld [vmem:[%s1714_s20 + $0x10] ss:$8 sps:$4 sm:$0xff]  }
  0x5e   : > { %1079 = vmatprep.subr.bf16.mxu0 %v1285_v4  ;;  %1189 = vmatprep.subr.bf16.mxu1 %v1285_v4  ;;  %v1297_v18 = vld [vmem:[%s1714_s20] ss:$8 sps:$4 sm:$0xff]   ;;  %v1305_v21 = vld [vmem:[%s1714_s20 + $0x94] ss:$8 sps:$4 sm:$0xff]   ;;  %v1308_v23 = vld [vmem:[%s1714_s20 + $0x90] ss:$8 sps:$4 sm:$0xff]  }
  0x5f   : > { %647 = vmatprep.mubr.bf16.mxu1 %v1302_v12  ;;  %v1300_v19 = vld [vmem:[%s1714_s20 + $0x80] ss:$8 sps:$4 sm:$0xff]   ;;  %v1309_v24 = vld [vmem:[%s1714_s20 + $0x24] ss:$8 sps:$4 sm:$0xff]   ;;  %v1315_v28 = vld [vmem:[%s1714_s20 + $0x34] ss:$8 sps:$4 sm:$0xff]  }
  0x60   : > { %v1311_v25 = vld [vmem:[%s1714_s20 + $0xa4] ss:$8 sps:$4 sm:$0xff]   ;;  %v1313_v26 = vld [vmem:[%s1714_s20 + $0x20] ss:$8 sps:$4 sm:$0xff]   ;;  %v1317_v29 = vld [vmem:[%s1714_s20 + $0xb4] ss:$8 sps:$4 sm:$0xff]  }
  0x61   : > { %1080 = vmatpush3.bf16.msra.mxu0 %v1286_v5  ;;  %1197 = vmatpush3.bf16.msra.mxu1 %v1286_v5  ;;  %v1314_v27 = vld [vmem:[%s1714_s20 + $0xa0] ss:$8 sps:$4 sm:$0xff]   ;;  %v1319_v30 = vld [vmem:[%s1714_s20 + $0x30] ss:$8 sps:$4 sm:$0xff]   ;;  %v1321_v32 = vld [vmem:[%s1714_s20 + $0x44] ss:$8 sps:$4 sm:$0xff]  }
  0x62   : > { %1081 = vmatprep.subr.bf16.mxu0 %v1287_v6  ;;  %1190 = vmatprep.subr.bf16.mxu1 %v1287_v6  ;;  %v1320_v31 = vld [vmem:[%s1714_s20 + $0xb0] ss:$8 sps:$4 sm:$0xff]   ;;  %v1323_v33 = vld [vmem:[%s1714_s20 + $0xc4] ss:$8 sps:$4 sm:$0xff]   ;;  %v1325_v34 = vld [vmem:[%s1714_s20 + $0x40] ss:$8 sps:$4 sm:$0xff]  }
  0x63   : > { %v1326_v35 = vld [vmem:[%s1714_s20 + $0xc0] ss:$8 sps:$4 sm:$0xff]   ;;  %v1327_v36 = vld [vmem:[%s1714_s20 + $0x54] ss:$8 sps:$4 sm:$0xff]   ;;  %v1331_v38 = vld [vmem:[%s1714_s20 + $0x50] ss:$8 sps:$4 sm:$0xff]  }
  0x64   : > { %v1329_v37 = vld [vmem:[%s1714_s20 + $0xd4] ss:$8 sps:$4 sm:$0xff]   ;;  %v1332_v39 = vld [vmem:[%s1714_s20 + $0xd0] ss:$8 sps:$4 sm:$0xff]   ;;  %v1333_v40 = vld [vmem:[%s1714_s20 + $0x64] ss:$8 sps:$4 sm:$0xff]  }
  0x65   : > { %1082 = vmatpush3.bf16.msra.mxu0 %v1288_v7  ;;  %1198 = vmatpush3.bf16.msra.mxu1 %v1288_v7  ;;  %v1335_v41 = vld [vmem:[%s1714_s20 + $0xe4] ss:$8 sps:$4 sm:$0xff]   ;;  %v1337_v42 = vld [vmem:[%s1714_s20 + $0x60] ss:$8 sps:$4 sm:$0xff]   ;;  %v1339_v44 = vld [vmem:[%s1714_s20 + $0x74] ss:$8 sps:$4 sm:$0xff]  }
  0x66   : > { %1083 = vmatprep.subr.bf16.mxu0 %v1289_v8  ;;  %1191 = vmatprep.subr.bf16.mxu1 %v1289_v8  ;;  %v1338_v43 = vld [vmem:[%s1714_s20 + $0xe0] ss:$8 sps:$4 sm:$0xff]   ;;  %v1341_v45 = vld [vmem:[%s1714_s20 + $0xf4] ss:$8 sps:$4 sm:$0xff]   ;;  %v1343_v46 = vld [vmem:[%s1714_s20 + $0x70] ss:$8 sps:$4 sm:$0xff]  }
  0x67   : > { %v1344_v47 = vld [vmem:[%s1714_s20 + $0xf0] ss:$8 sps:$4 sm:$0xff]  }
  0x69   : > { %1084 = vmatpush3.bf16.msra.mxu0 %v1290_v9  ;;  %1199 = vmatpush3.bf16.msra.mxu1 %v1290_v9 }
  0x6a   : > { %1085 = vmatprep.subr.bf16.mxu0 %v1291_v10  ;;  %1192 = vmatprep.subr.bf16.mxu1 %v1291_v10 }
  0x6d   : > { %1086 = vmatpush3.bf16.msra.mxu0 %v1292_v13  ;;  %1200 = vmatpush3.bf16.msra.mxu1 %v1292_v13 }
  0x6e   : > { %1087 = vmatprep.subr.bf16.mxu0 %v1293_v14  ;;  %1193 = vmatprep.subr.bf16.mxu1 %v1293_v14 }
  0x71   : > { %1088 = vmatpush3.bf16.msra.mxu0 %v1294_v15  ;;  %1201 = vmatpush3.bf16.msra.mxu1 %v1294_v15 }
  0x72   : > { %1089 = vmatprep.subr.bf16.mxu0 %v1295_v16  ;;  %1194 = vmatprep.subr.bf16.mxu1 %v1295_v16 }
  0x75   : > { %1090 = vmatpush3.bf16.msra.mxu0 %v1296_v17  ;;  %1202 = vmatpush3.bf16.msra.mxu1 %v1296_v17 }
  0x78   : > { %584 = vmatmul.mubr.bf16.vlgmr.msra.gmra.mrb[0].mxu0 %v1297_v18  ;;  %648 = vmatmul.mubr.bf16.vlgmr.msra.gmra.mrb[0].mxu1 %v1300_v19 }
  0x79   : > { %591 = vmatprep.mubr.bf16.mxu0 %v1303_v20  ;;  %655 = vmatprep.mubr.bf16.mxu1 %v1305_v21 }
  0x80   : > { %592 = vmatmul.mubr.bf16.gmra.mrb[4].mxu0 %v1307_v22  ;;  %656 = vmatmul.mubr.bf16.gmra.mrb[4].mxu1 %v1308_v23 }
  0x81   : > { %599 = vmatprep.mubr.bf16.mxu0 %v1309_v24  ;;  %663 = vmatprep.mubr.bf16.mxu1 %v1311_v25 }
  0x88   : > { %600 = vmatmul.mubr.bf16.gmra.mrb[8].mxu0 %v1313_v26  ;;  %664 = vmatmul.mubr.bf16.gmra.mrb[8].mxu1 %v1314_v27 }
  0x89   : > { %607 = vmatprep.mubr.bf16.mxu0 %v1315_v28  ;;  %671 = vmatprep.mubr.bf16.mxu1 %v1317_v29 }
  0x90   : > { %608 = vmatmul.mubr.bf16.gmra.mrb[12].mxu0 %v1319_v30  ;;  %672 = vmatmul.mubr.bf16.gmra.mrb[12].mxu1 %v1320_v31 }
  0x91   : > { %615 = vmatprep.mubr.bf16.mxu0 %v1321_v32  ;;  %679 = vmatprep.mubr.bf16.mxu1 %v1323_v33 }
  0x98   : > { %616 = vmatmul.mubr.bf16.gmra.mrb[16].mxu0 %v1325_v34  ;;  %680 = vmatmul.mubr.bf16.gmra.mrb[16].mxu1 %v1326_v35 }
  0x99   : > { %623 = vmatprep.mubr.bf16.mxu0 %v1327_v36  ;;  %687 = vmatprep.mubr.bf16.mxu1 %v1329_v37 }
  0xa0   : > { %624 = vmatmul.mubr.bf16.gmra.mrb[20].mxu0 %v1331_v38  ;;  %688 = vmatmul.mubr.bf16.gmra.mrb[20].mxu1 %v1332_v39 }
  0xa1   : > { %631 = vmatprep.mubr.bf16.mxu0 %v1333_v40  ;;  %695 = vmatprep.mubr.bf16.mxu1 %v1335_v41 }
  0xa8   : > { %632 = vmatmul.mubr.bf16.gmra.mrb[24].mxu0 %v1337_v42  ;;  %696 = vmatmul.mubr.bf16.gmra.mrb[24].mxu1 %v1338_v43 }
  0xa9   : > { %639 = vmatprep.mubr.bf16.mxu0 %v1339_v44  ;;  %703 = vmatprep.mubr.bf16.mxu1 %v1341_v45 }
  0xb0   : > { %640 = vmatmul.mubr.bf16.gmra.mrb[28].mxu0 %v1343_v46  ;;  %704 = vmatmul.mubr.bf16.gmra.mrb[28].mxu1 %v1344_v47 }
 0x14b   : > { %v1091_v48 = vpop.f32.mrb[0].mxu0  ;;  %v1139_v49 = vpop.f32.mrb[0].mxu1 }
 0x14c   : > { %v1092_v50 = vpop.f32.mrb[1].mxu0  ;;  %v1140_v51 = vpop.f32.mrb[1].mxu1 }
 0x14d   : > { %v1756_v52 = vadd.f32 %v1092_v50, %v1091_v48  ;;  %v1758_v53 = vadd.f32 %v1140_v51, %v1139_v49  ;;  %v1094_v54 = vpop.f32.mrb[2].mxu0  ;;  %v1142_v55 = vpop.f32.mrb[2].mxu1 }
 0x14e   : > { %v1095_v56 = vpop.f32.mrb[3].mxu0  ;;  %v1143_v57 = vpop.f32.mrb[3].mxu1 }
 0x14f   : > { %712 = vst [vmem:[%s1762_s21] sm:$0xff] %v1756_v52  ;;  %728 = vst [vmem:[%s1762_s21 + $0x80] sm:$0xff] %v1758_v53  ;;  %v1768_v58 = vadd.f32 %v1095_v56, %v1094_v54  ;;  %v1770_v59 = vadd.f32 %v1143_v57, %v1142_v55 }
 0x151   : > { %713 = vst [vmem:[%s1762_s21 + $0x8] sm:$0xff] %v1768_v58  ;;  %729 = vst [vmem:[%s1762_s21 + $0x88] sm:$0xff] %v1770_v59 }
 0x153   : > { %v1097_v60 = vpop.f32.mrb[4].mxu0  ;;  %v1145_v61 = vpop.f32.mrb[4].mxu1 }
 0x154   : > { %v1098_v62 = vpop.f32.mrb[5].mxu0  ;;  %v1146_v63 = vpop.f32.mrb[5].mxu1 }
 0x155   : > { %v1776_v0 = vadd.f32 %v1098_v62, %v1097_v60  ;;  %v1778_v1 = vadd.f32 %v1146_v63, %v1145_v61  ;;  %v1100_v2 = vpop.f32.mrb[6].mxu0  ;;  %v1148_v3 = vpop.f32.mrb[6].mxu1 }
 0x156   : > { %v1101_v4 = vpop.f32.mrb[7].mxu0  ;;  %v1149_v5 = vpop.f32.mrb[7].mxu1 }
 0x157   : > { %714 = vst [vmem:[%s1762_s21 + $0x10] sm:$0xff] %v1776_v0  ;;  %730 = vst [vmem:[%s1762_s21 + $0x90] sm:$0xff] %v1778_v1  ;;  %v1784_v6 = vadd.f32 %v1101_v4, %v1100_v2  ;;  %v1786_v7 = vadd.f32 %v1149_v5, %v1148_v3 }
 0x159   : > { %715 = vst [vmem:[%s1762_s21 + $0x18] sm:$0xff] %v1784_v6  ;;  %731 = vst [vmem:[%s1762_s21 + $0x98] sm:$0xff] %v1786_v7 }
 0x15b   : > { %v1103_v8 = vpop.f32.mrb[8].mxu0  ;;  %v1151_v9 = vpop.f32.mrb[8].mxu1 }
 0x15c   : > { %v1104_v10 = vpop.f32.mrb[9].mxu0  ;;  %v1152_v11 = vpop.f32.mrb[9].mxu1 }
 0x15d   : > { %v1792_v12 = vadd.f32 %v1104_v10, %v1103_v8  ;;  %v1794_v13 = vadd.f32 %v1152_v11, %v1151_v9  ;;  %v1106_v14 = vpop.f32.mrb[10].mxu0  ;;  %v1154_v15 = vpop.f32.mrb[10].mxu1 }
 0x15e   : > { %v1107_v16 = vpop.f32.mrb[11].mxu0  ;;  %v1155_v17 = vpop.f32.mrb[11].mxu1 }
 0x15f   : > { %716 = vst [vmem:[%s1762_s21 + $0x20] sm:$0xff] %v1792_v12  ;;  %732 = vst [vmem:[%s1762_s21 + $0xa0] sm:$0xff] %v1794_v13  ;;  %v1800_v18 = vadd.f32 %v1107_v16, %v1106_v14  ;;  %v1802_v19 = vadd.f32 %v1155_v17, %v1154_v15 }
 0x161   : > { %717 = vst [vmem:[%s1762_s21 + $0x28] sm:$0xff] %v1800_v18  ;;  %733 = vst [vmem:[%s1762_s21 + $0xa8] sm:$0xff] %v1802_v19 }
 0x163   : > { %v1109_v20 = vpop.f32.mrb[12].mxu0  ;;  %v1157_v21 = vpop.f32.mrb[12].mxu1 }
 0x164   : > { %v1110_v22 = vpop.f32.mrb[13].mxu0  ;;  %v1158_v23 = vpop.f32.mrb[13].mxu1 }
 0x165   : > { %v1808_v24 = vadd.f32 %v1110_v22, %v1109_v20  ;;  %v1810_v25 = vadd.f32 %v1158_v23, %v1157_v21  ;;  %v1112_v26 = vpop.f32.mrb[14].mxu0  ;;  %v1160_v27 = vpop.f32.mrb[14].mxu1 }
 0x166   : > { %v1113_v28 = vpop.f32.mrb[15].mxu0  ;;  %v1161_v29 = vpop.f32.mrb[15].mxu1 }
 0x167   : > { %718 = vst [vmem:[%s1762_s21 + $0x30] sm:$0xff] %v1808_v24  ;;  %734 = vst [vmem:[%s1762_s21 + $0xb0] sm:$0xff] %v1810_v25  ;;  %v1816_v30 = vadd.f32 %v1113_v28, %v1112_v26  ;;  %v1818_v31 = vadd.f32 %v1161_v29, %v1160_v27 }
 0x169   : > { %719 = vst [vmem:[%s1762_s21 + $0x38] sm:$0xff] %v1816_v30  ;;  %735 = vst [vmem:[%s1762_s21 + $0xb8] sm:$0xff] %v1818_v31 }
 0x16b   : > { %v1115_v32 = vpop.f32.mrb[16].mxu0  ;;  %v1163_v33 = vpop.f32.mrb[16].mxu1 }
 0x16c   : > { %v1116_v34 = vpop.f32.mrb[17].mxu0  ;;  %v1164_v35 = vpop.f32.mrb[17].mxu1 }
 0x16d   : > { %v1824_v36 = vadd.f32 %v1116_v34, %v1115_v32  ;;  %v1826_v37 = vadd.f32 %v1164_v35, %v1163_v33  ;;  %v1118_v38 = vpop.f32.mrb[18].mxu0  ;;  %v1166_v39 = vpop.f32.mrb[18].mxu1  ;;  %v1537_v32 = vmov (!%p2096_p4), 0.0  }
 0x16e   : > { %v1119_v40 = vpop.f32.mrb[19].mxu0  ;;  %v1167_v41 = vpop.f32.mrb[19].mxu1  ;;  %748 = vst [vmem:[#allocation8] sm:$0x1] (!%p2096_p4), %v1537_v32  ;;  %749 = vst [vmem:[#allocation10] sm:$0x1] (!%p2096_p4), %v1537_v32 }
 0x16f   : > { %720 = vst [vmem:[%s1762_s21 + $0x40] sm:$0xff] %v1824_v36  ;;  %736 = vst [vmem:[%s1762_s21 + $0xc0] sm:$0xff] %v1826_v37  ;;  %v1832_v42 = vadd.f32 %v1119_v40, %v1118_v38  ;;  %v1834_v43 = vadd.f32 %v1167_v41, %v1166_v39 }
 0x171   : > { %721 = vst [vmem:[%s1762_s21 + $0x48] sm:$0xff] %v1832_v42  ;;  %737 = vst [vmem:[%s1762_s21 + $0xc8] sm:$0xff] %v1834_v43 }
 0x173   : > { %v1121_v44 = vpop.f32.mrb[20].mxu0  ;;  %v1169_v45 = vpop.f32.mrb[20].mxu1 }
 0x174   : > { %v1122_v46 = vpop.f32.mrb[21].mxu0  ;;  %v1170_v47 = vpop.f32.mrb[21].mxu1 }
 0x175   : > { %v1840_v48 = vadd.f32 %v1122_v46, %v1121_v44  ;;  %v1842_v49 = vadd.f32 %v1170_v47, %v1169_v45  ;;  %v1124_v50 = vpop.f32.mrb[22].mxu0  ;;  %v1172_v51 = vpop.f32.mrb[22].mxu1 }
 0x176   : > { %v1125_v54 = vpop.f32.mrb[23].mxu0  ;;  %v1173_v55 = vpop.f32.mrb[23].mxu1 }
 0x177   : > { %722 = vst [vmem:[%s1762_s21 + $0x50] sm:$0xff] %v1840_v48  ;;  %738 = vst [vmem:[%s1762_s21 + $0xd0] sm:$0xff] %v1842_v49  ;;  %v1848_v56 = vadd.f32 %v1125_v54, %v1124_v50  ;;  %v1850_v57 = vadd.f32 %v1173_v55, %v1172_v51 }
 0x179   : > { %723 = vst [vmem:[%s1762_s21 + $0x58] sm:$0xff] %v1848_v56  ;;  %739 = vst [vmem:[%s1762_s21 + $0xd8] sm:$0xff] %v1850_v57 }
 0x17b   : > { %v1127_v60 = vpop.f32.mrb[24].mxu0  ;;  %v1175_v61 = vpop.f32.mrb[24].mxu1 }
 0x17c   : > { %v1128_v62 = vpop.f32.mrb[25].mxu0  ;;  %v1176_v63 = vpop.f32.mrb[25].mxu1 }
 0x17d   : > { %v1856_v2 = vadd.f32 %v1128_v62, %v1127_v60  ;;  %v1858_v3 = vadd.f32 %v1176_v63, %v1175_v61  ;;  %v1130_v4 = vpop.f32.mrb[26].mxu0  ;;  %v1178_v5 = vpop.f32.mrb[26].mxu1 }
 0x17e   : > { %v1131_v8 = vpop.f32.mrb[27].mxu0  ;;  %v1179_v9 = vpop.f32.mrb[27].mxu1 }
 0x17f   : > { %724 = vst [vmem:[%s1762_s21 + $0x60] sm:$0xff] %v1856_v2  ;;  %740 = vst [vmem:[%s1762_s21 + $0xe0] sm:$0xff] %v1858_v3  ;;  %v1864_v10 = vadd.f32 %v1131_v8, %v1130_v4  ;;  %v1866_v11 = vadd.f32 %v1179_v9, %v1178_v5 }
 0x181   : > { %725 = vst [vmem:[%s1762_s21 + $0x68] sm:$0xff] %v1864_v10  ;;  %741 = vst [vmem:[%s1762_s21 + $0xe8] sm:$0xff] %v1866_v11 }
 0x183   : > { %v1133_v14 = vpop.f32.mrb[28].mxu0  ;;  %v1181_v15 = vpop.f32.mrb[28].mxu1  ;;  %747 = sbr.rel (%p2096_p4) target bundleno = 394 (0x18a), region = 40 }
 0x184   : > { %v1134_v16 = vpop.f32.mrb[29].mxu0  ;;  %v1182_v17 = vpop.f32.mrb[29].mxu1 }
 0x185   : > { %v1872_v20 = vadd.f32 %v1134_v16, %v1133_v14  ;;  %v1874_v21 = vadd.f32 %v1182_v17, %v1181_v15  ;;  %v1136_v22 = vpop.f32.mrb[30].mxu0  ;;  %v1184_v23 = vpop.f32.mrb[30].mxu1 }
 0x186   : > { %v1137_v26 = vpop.f32.mrb[31].mxu0  ;;  %v1185_v27 = vpop.f32.mrb[31].mxu1 }
 0x187   : > { %726 = vst [vmem:[%s1762_s21 + $0x70] sm:$0xff] %v1872_v20  ;;  %742 = vst [vmem:[%s1762_s21 + $0xf0] sm:$0xff] %v1874_v21  ;;  %v1880_v28 = vadd.f32 %v1137_v26, %v1136_v22  ;;  %v1882_v29 = vadd.f32 %v1185_v27, %v1184_v23 }
 0x189   : > { %727 = vst [vmem:[%s1762_s21 + $0x78] sm:$0xff] %v1880_v28  ;;  %743 = vst [vmem:[%s1762_s21 + $0xf8] sm:$0xff] %v1882_v29 }
 0x18a PF: > { %v751_v33 = vadd.f32 %v1768_v58, %v1756_v52  ;;  %s1074_s23 = sshll.u32 %s1589_s19, 12  ;;  %s876_s10 = sshll.u32 %s1762_s21, 4  ;;  %v791_v38 = vmul.f32 %v1756_v52, %v1756_v52  ;;  %v792_v39 = vmul.f32 %v1768_v58, %v1768_v58  ;;  %s1901_s10 = int_to_ptr.vmem [resolvable:$true] %s876_s10 }
 0x18b   : > { %s1897_s29 = scalar_lea.hbm %s2079_s2, %s1074_s23  ;;  %s863_s6 = scalar_lea.sflag [#allocation4], %s1708_s12 }
 0x18c   : > { %v752_v34 = vadd.f32 %v1776_v0, %v751_v33  ;;  %s1403_s5 = scalar_lea.vmem %s1901_s10, 4096  ;;  %s1538_s7 = smov [#allocation7]  }
 0x18d   : > { %p1404_p6 = scmp.ne.s32.totalorder %s1901_s10, %s1403_s5  ;;  %s1407_s26 = sshll.u32 %s1538_s7, 4  ;;  %s1408_s26 = int_to_ptr.vmem [resolvable:$false] %s1407_s26 }
 0x18e   : > { %v753_v35 = vadd.f32 %v1784_v6, %v752_v34  ;;  %s1409_s8 = scalar_lea.vmem %s1408_s26, 8192  ;;  %p1410_p13 = scmp.lt.s32.totalorder %s1901_s10, %s1408_s26 }
 0x18f   : > { %p1405_p8 = pnand %p1404_p6, %p1660_p11  ;;  %p1411_p3 = scmp.lt.s32.totalorder %s1409_s8, %s1403_s5 }
 0x190   : > { %v754_v40 = vadd.f32 %v1792_v12, %v753_v35 }
 0x191   : > { %p1406_p9 = pneg %p1405_p8  ;;  %p1412_p7 = por %p1411_p3, %p1410_p13 }
 0x193   : > { %p1413_p10 = pnand %p1412_p7, %p1406_p9 }
 0x195   : > { %1416 = shalt.err (!%p1413_p10)
}
 0x196   : > { %s1417_s25 = scalar_lea.hbm %s1897_s29, 4096  ;;  %s1421_s14 = scalar_lea.hbm %s2079_s2, 8192 }
 0x197   : > { %p1418_p2 = scmp.ne.s32.totalorder %s1897_s29, %s1417_s25  ;;  %p1422_p12 = scmp.lt.u32.totalorder %s1897_s29, %s2079_s2 }
 0x198   : > { %p1423_p1 = scmp.lt.u32.totalorder %s1421_s14, %s1417_s25  ;;  %p1425_p6 = scmp.lt.u32.totalorder %s1417_s25, %s1897_s29 }
 0x199   : > { %p1419_p0 = pnand %p1418_p2, %p1660_p11 }
 0x19a   : > { %p1424_p4 = por %p1423_p1, %p1422_p12 }
 0x19b   : > { %p1420_p5 = pneg %p1419_p0 }
 0x19c   : > { %p1426_p8 = por %p1425_p6, %p1424_p4 }
 0x19e   : > { %p1427_p9 = pnand %p1426_p8, %p1420_p5 }
 0x1a0   : > { %1430 = shalt.err (!%p1427_p9)
}
 0x1a1   : > { %s1539_s23 = smov 128   ;;  %s1540_s9 = smov 8   ;;  %v793_v52 = vmul.f32 %v1776_v0, %v1776_v0  ;;  %v755_v58 = vadd.f32 %v1800_v18, %v754_v40  ;;  %v794_v41 = vmul.f32 %v1784_v6, %v1784_v6  ;;  %v823_v44 = vadd.f32 %v792_v39, %v791_v38 }
 0x1a2   : > { %1209 = dma.vmem_to_hbm [thread:$0]  (%p1660_p11), %s1901_s10, 4096, %s1897_s29, %s863_s6, %s1539_s23, %s1539_s23, %s1540_s9   ;;  %v795_v46 = vmul.f32 %v1792_v12, %v1792_v12  ;;  %v796_v51 = vmul.f32 %v1800_v18, %v1800_v18  ;;  %v797_v55 = vmul.f32 %v1808_v24, %v1808_v24  ;;  %v798_v61 = vmul.f32 %v1816_v30, %v1816_v30 }
 0x1a3   : > { %v756_v45 = vadd.f32 %v1808_v24, %v755_v58  ;;  %v824_v47 = vadd.f32 %v823_v44, %v793_v52  ;;  %v799_v63 = vmul.f32 %v1824_v36, %v1824_v36  ;;  %v800_v5 = vmul.f32 %v1832_v42, %v1832_v42  ;;  %s1541_s30 = smov [#allocation8]   ;;  %p2097_p13 = scmp.eq.s32.totalorder %s1589_s19, 1 }
 0x1a4   : > { %v801_v9 = vmul.f32 %v1840_v48, %v1840_v48  ;;  %v802_v15 = vmul.f32 %v1848_v56, %v1848_v56  ;;  %v803_v17 = vmul.f32 %v1856_v2, %v1856_v2  ;;  %v804_v23 = vmul.f32 %v1864_v10, %v1864_v10  ;;  %s890_s12 = sshll.u32 %s1541_s30, 4  ;;  %s891_s12 = int_to_ptr.vmem [resolvable:$true] %s890_s12 }
 0x1a5   : > { %v757_v50 = vadd.f32 %v1816_v30, %v756_v45  ;;  %v825_v54 = vadd.f32 %v824_v47, %v794_v41  ;;  %v805_v27 = vmul.f32 %v1872_v20, %v1872_v20  ;;  %v806_v33 = vmul.f32 %v1880_v28, %v1880_v28  ;;  %s1431_s28 = scalar_lea.vmem %s891_s12, 16  ;;  %s1437_s29 = scalar_lea.vmem %s891_s12, 32 }
 0x1a6   : > { %v807_v35 = vmul.f32 %v1758_v53, %v1758_v53  ;;  %v808_v39 = vmul.f32 %v1770_v59, %v1770_v59  ;;  %v809_v52 = vmul.f32 %v1778_v1, %v1778_v1  ;;  %v810_v41 = vmul.f32 %v1786_v7, %v1786_v7  ;;  %p1432_p11 = scmp.ne.s32.totalorder %s891_s12, %s1431_s28  ;;  %p1438_p10 = scmp.lt.s32.totalorder %s891_s12, %s891_s12 }
 0x1a7   : > { %v758_v0 = vadd.f32 %v1824_v36, %v757_v50  ;;  %v826_v60 = vadd.f32 %v825_v54, %v795_v46  ;;  %v811_v45 = vmul.f32 %v1794_v13, %v1794_v13  ;;  %v812_v47 = vmul.f32 %v1802_v19, %v1802_v19  ;;  %p1439_p2 = scmp.lt.s32.totalorder %s1437_s29, %s1431_s28 }
 0x1a8   : > { %p1433_p3 = pnand %p1432_p11, %p2097_p13 }
 0x1a9   : > { %v759_v6 = vadd.f32 %v1832_v42, %v758_v0  ;;  %v827_v62 = vadd.f32 %v826_v60, %v796_v51  ;;  %v813_v51 = vmul.f32 %v1810_v25, %v1810_v25  ;;  %v814_v0 = vmul.f32 %v1818_v31, %v1818_v31  ;;  %p1440_p0 = por %p1439_p2, %p1438_p10 }
 0x1aa   : > { %v815_v60 = vmul.f32 %v1826_v37, %v1826_v37  ;;  %p1434_p7 = pneg %p1433_p3 }
 0x1ab   : > { %v760_v12 = vadd.f32 %v1840_v48, %v759_v6  ;;  %v828_v4 = vadd.f32 %v827_v62, %v797_v55 }
 0x1ac   : > { %p1441_p5 = pnand %p1440_p0, %p1434_p7 }
 0x1ad   : > { %v761_v18 = vadd.f32 %v1848_v56, %v760_v12  ;;  %v829_v8 = vadd.f32 %v828_v4, %v798_v61  ;;  %v816_v61 = vmul.f32 %v1834_v43, %v1834_v43  ;;  %v817_v12 = vmul.f32 %v1842_v49, %v1842_v49 }
 0x1ae   : > { %v818_v4 = vmul.f32 %v1850_v57, %v1850_v57 }
 0x1af   : > { %v762_v24 = vadd.f32 %v1856_v2, %v761_v18  ;;  %v830_v14 = vadd.f32 %v829_v8, %v799_v63 }
 0x1b1   : > { %v763_v30 = vadd.f32 %v1864_v10, %v762_v24  ;;  %v831_v16 = vadd.f32 %v830_v14, %v800_v5  ;;  %v819_v5 = vmul.f32 %v1858_v3, %v1858_v3  ;;  %v820_v24 = vmul.f32 %v1866_v11, %v1866_v11 }
 0x1b2   : > { %v821_v14 = vmul.f32 %v1874_v21, %v1874_v21 }
 0x1b3   : > { %v764_v36 = vadd.f32 %v1872_v20, %v763_v30  ;;  %v832_v22 = vadd.f32 %v831_v16, %v801_v9 }
 0x1b5   : > { %v765_v42 = vadd.f32 %v1880_v28, %v764_v36  ;;  %v833_v26 = vadd.f32 %v832_v22, %v802_v15 }
 0x1b7   : > { %v766_v48 = vadd.f32 %v1758_v53, %v765_v42  ;;  %v834_v32 = vadd.f32 %v833_v26, %v803_v17 }
 0x1b9   : > { %v767_v56 = vadd.f32 %v1770_v59, %v766_v48  ;;  %v835_v34 = vadd.f32 %v834_v32, %v804_v23  ;;  %v750_v23 = vld [vmem:[#allocation8] sm:$0x1] }
 0x1bb   : > { %v768_v2 = vadd.f32 %v1778_v1, %v767_v56  ;;  %v836_v38 = vadd.f32 %v835_v34, %v805_v27 }
 0x1bd   : > { %v769_v10 = vadd.f32 %v1786_v7, %v768_v2  ;;  %v837_v40 = vadd.f32 %v836_v38, %v806_v33 }
 0x1bf   : > { %v770_v20 = vadd.f32 %v1794_v13, %v769_v10  ;;  %v838_v58 = vadd.f32 %v837_v40, %v807_v35 }
 0x1c1   : > { %v771_v28 = vadd.f32 %v1802_v19, %v770_v20  ;;  %v839_v44 = vadd.f32 %v838_v58, %v808_v39 }
 0x1c3   : > { %v772_v53 = vadd.f32 %v1810_v25, %v771_v28  ;;  %v840_v46 = vadd.f32 %v839_v44, %v809_v52 }
 0x1c5   : > { %v773_v59 = vadd.f32 %v1818_v31, %v772_v53  ;;  %v841_v50 = vadd.f32 %v840_v46, %v810_v41 }
 0x1c7   : > { %v774_v1 = vadd.f32 %v1826_v37, %v773_v59  ;;  %v842_v54 = vadd.f32 %v841_v50, %v811_v45 }
 0x1c9   : > { %v775_v7 = vadd.f32 %v1834_v43, %v774_v1  ;;  %v843_v55 = vadd.f32 %v842_v54, %v812_v47 }
 0x1cb   : > { %v776_v13 = vadd.f32 %v1842_v49, %v775_v7  ;;  %v844_v6 = vadd.f32 %v843_v55, %v813_v51 }
 0x1cd   : > { %v777_v19 = vadd.f32 %v1850_v57, %v776_v13  ;;  %v845_v62 = vadd.f32 %v844_v6, %v814_v0  ;;  %v822_v57 = vmul.f32 %v1882_v29, %v1882_v29 }
 0x1cf   : > { %v778_v25 = vadd.f32 %v1858_v3, %v777_v19  ;;  %v846_v63 = vadd.f32 %v845_v62, %v815_v60 }
 0x1d1   : > { %v779_v31 = vadd.f32 %v1866_v11, %v778_v25  ;;  %v847_v18 = vadd.f32 %v846_v63, %v816_v61 }
 0x1d3   : > { %v780_v37 = vadd.f32 %v1874_v21, %v779_v31  ;;  %v848_v8 = vadd.f32 %v847_v18, %v817_v12 }
 0x1d5   : > { %v781_v43 = vadd.f32 %v1882_v29, %v780_v37  ;;  %v849_v9 = vadd.f32 %v848_v8, %v818_v4 }
 0x1d7   : > { %v782_v49 = vrot.slane %v781_v43, 4  ;;  %v850_v30 = vadd.f32 %v849_v9, %v819_v5 }
 0x1d9   : > { %v783_v15 = vadd.f32 %v782_v49, %v781_v43  ;;  %v851_v16 = vadd.f32 %v850_v30, %v820_v24 }
 0x1db   : > { %v784_v36 = vrot.slane %v783_v15, 2  ;;  %v852_v17 = vadd.f32 %v851_v16, %v821_v14 }
 0x1dd   : > { %v785_v3 = vadd.f32 %v784_v36, %v783_v15  ;;  %v853_v22 = vadd.f32 %v852_v17, %v822_v57 }
 0x1df   : > { %v786_v42 = vrot.slane %v785_v3, 1  ;;  %v854_v26 = vrot.slane %v853_v22, 4 }
 0x1e1   : > { %v787_v11 = vadd.f32 %v786_v42, %v785_v3  ;;  %v855_v48 = vadd.f32 %v854_v26, %v853_v22 }
 0x1e3   : > { %v788_v27 = vadd.f32 %v787_v11, %v750_v23  ;;  %v856_v21 = vrot.slane %v855_v48, 2 }
 0x1e5   : > { %789 = vst [vmem:[#allocation8] sm:$0x1] %v788_v27  ;;  %v857_v32 = vadd.f32 %v856_v21, %v855_v48 }
 0x1e6   : > { %1444 = shalt.err (!%p1441_p5)
}
 0x1e7   : > { %s1445_s5 = scalar_lea.hbm %s2080_s3, 16  ;;  %p2098_p1 = pmov %p2097_p13 }
 0x1e8   : > { %p1446_p12 = scmp.ne.s32.totalorder %s2080_s3, %s1445_s5  ;;  %p1451_p8 = scmp.lt.u32.totalorder %s1445_s5, %s2080_s3 }
 0x1ea   : > { %p1447_p4 = pnand %p1446_p12, %p2098_p1 }
 0x1ec   : > { %p1448_p6 = pneg %p1447_p4 }
 0x1ee   : > { %p1453_p9 = pnand %p1451_p8, %p1448_p6 }
 0x1f0   : > { %1456 = shalt.err (!%p1453_p9)
}
 0x1f1   : > { %p2099_p11 = pmov %p2098_p1  ;;  %v858_v29 = vrot.slane %v857_v32, 1  ;;  %v790_v56 = vld [vmem:[#allocation10] sm:$0x1]  ;;  %s1542_s14 = smov [#allocation10]  }
 0x1f2   : > { %s901_s20 = sshll.u32 %s1542_s14, 4  ;;  %p2100_p3 = pmov %p2098_p1  ;;  %s902_s20 = int_to_ptr.vmem [resolvable:$true] %s901_s20 }
 0x1f3   : > { %1211 = dma.vmem_to_hbm [thread:$0]  (%p2099_p11), %s891_s12, 16, %s2080_s3, [#allocation9]   ;;  %v859_v33 = vadd.f32 %v858_v29, %v857_v32 }
 0x1f4   : > { %s1457_s21 = scalar_lea.vmem %s902_s20, 16  ;;  %s1463_s23 = scalar_lea.vmem %s902_s20, 32 }
 0x1f5   : > { %v860_v34 = vadd.f32 %v859_v33, %v790_v56  ;;  %p1458_p13 = scmp.ne.s32.totalorder %s902_s20, %s1457_s21  ;;  %p1464_p2 = scmp.lt.s32.totalorder %s902_s20, %s902_s20 }
 0x1f6   : > { %p1465_p0 = scmp.lt.s32.totalorder %s1463_s23, %s1457_s21 }
 0x1f7   : > { %861 = vst [vmem:[#allocation10] sm:$0x1] %v860_v34  ;;  %p1459_p7 = pnand %p1458_p13, %p2100_p3 }
 0x1f8   : > { %p1466_p5 = por %p1465_p0, %p1464_p2 }
 0x1f9   : > { %p1460_p10 = pneg %p1459_p7 }
 0x1fb   : > { %p1467_p12 = pnand %p1466_p5, %p1460_p10 }
 0x1fd   : > { %1470 = shalt.err (!%p1467_p12)
}
 0x1fe   : > { %s1471_s12 = scalar_lea.hbm %s2081_s4, 16  ;;  %p2101_p4 = pmov %p2100_p3 }
 0x1ff   : > { %p1472_p1 = scmp.ne.s32.totalorder %s2081_s4, %s1471_s12  ;;  %p1477_p9 = scmp.lt.u32.totalorder %s1471_s12, %s2081_s4 }
 0x201   : > { %p1473_p6 = pnand %p1472_p1, %p2101_p4 }
 0x203   : > { %p1474_p8 = pneg %p1473_p6 }
 0x205   : > { %p1479_p11 = pnand %p1477_p9, %p1474_p8 }
 0x207   : > { %1482 = shalt.err (!%p1479_p11)
}
 0x208   : > { %p2102_p13 = pmov %p2100_p3 }
 0x20a   : > { %1213 = dma.vmem_to_hbm [thread:$0]  (%p2102_p13), %s902_s20, 16, %s2081_s4, [#allocation9]  }
 0x20b   : > { %1508 = dma.done.wait (%p2100_p3), [#allocation9], 32   ;;  %p2103_p7 = pmov %p2100_p3 }
 0x20d   : > { %1510 = vsyncadd (%p2103_p7), [#allocation9], 4294967264 }
 0x20e PF: > { %s921_s26 = sand.u32 1, %s1517_s15   ;;  %p2104_p10 = scmp.ne.s32.totalorder %s2086_s22, 0 }
 0x20f   : > { %p2105_p2 = scmp.ge.s32.totalorder %s1529_s18, 2  ;;  %s922_s8 = scalar_lea.sflag [#allocation4], %s921_s26 }
 0x211   : > { %p1228_p0 = pnand %p2105_p2, %p2104_p10 }
 0x213   : > { %1512 = dma.done.wait (!%p1228_p0), %s922_s8, 4096  }
 0x214   : > { %1514 = vsyncadd (!%p1228_p0), %s922_s8, 4294963200  ;;  %p20_p5 = scmp.ge.s32.totalorder %s1625_s27, 4   ;;  %s2106_s15 = smov %s1521_s16 }
 0x215   : > { %s2107_s16 = smov %s1525_s17  ;;  %s2108_s17 = smov %s1656_s24 }
 0x216   : > { %s2109_s18 = smov %s1625_s27  ;;  %22 = sbr.rel (!%p20_p5) target bundleno = 7 (0x7), region = 97 }
 0x21d   :  { %927 = vsyncpa [#allocation3], 1 }
 0x21e   :  { %929 = vsyncpa [#allocation3 + $0x1], 1 }
 0x21f   :  { %930 = vsyncpa [#allocation6], 1 }
 0x220   :  { %931 = vsyncpa [#allocation4], 1 }
 0x221   :  { %933 = vsyncpa [#allocation4 + $0x1], 1 }
 0x222   :  { %934 = vsyncpa [#allocation9], 1 }

</bundles_post_ra>
